<compile_context>
chip_gen: v6e
topology: v6e:2x2x1
jax: 0.10.0
libtpu: 0.0.40
codegen_flags: <defaults>
</compile_context>

<pallas_src>
import functools

import jax
import jax.numpy as jnp
from jax.experimental import pallas as pl
from jax.experimental.pallas import tpu as pltpu


def _round_up(x, m):
    return ((x + m - 1) // m) * m


def _fit_tile(d, pref, align):
    """Tile for a dim of length d: <= pref, a multiple of `align` (or the full dim),
    preferring an exact divisor of d so no pad + slice-back HBM copies are needed."""
    if d <= pref:
        return d                                   # single full-dim block (always legal)
    floor = min(pref, max(align, 256))
    t = (pref // align) * align
    while t >= floor:
        if d % t == 0:
            return t
        t -= align
    return (pref // align) * align                 # no good divisor: pad + slice


# ------------------------------ tiled bf16 matmul ----------------------------------
def _matmul_kernel(x_ref, w_ref, o_ref, acc_ref):
    @pl.when(pl.program_id(2) == 0)
    def _():
        acc_ref[...] = jnp.zeros_like(acc_ref)

    acc_ref[...] += jnp.dot(x_ref[...], w_ref[...],
                            preferred_element_type=jnp.float32)

    @pl.when(pl.program_id(2) == pl.num_programs(2) - 1)
    def _():
        o_ref[...] = acc_ref[...].astype(o_ref.dtype)


def pallas_matmul(x, w, *, out_dtype=jnp.bfloat16, tm=512, tn=1024, tk=512):
    """Tiled, pipelined matmul: bf16 MXU operands, f32 VMEM accumulator."""
    M, K = x.shape
    Kw, N = w.shape
    assert K == Kw
    x = x.astype(jnp.bfloat16)
    w = w.astype(jnp.bfloat16)

    tm = _fit_tile(M, tm, 8)
    tn = _fit_tile(N, tn, 128)
    tk = _fit_tile(K, tk, 128)
    Mp, Np, Kp = _round_up(M, tm), _round_up(N, tn), _round_up(K, tk)
    if (Mp, Kp) != (M, K):
        x = jnp.pad(x, ((0, Mp - M), (0, Kp - K)))
    if (Kp, Np) != (K, N):
        w = jnp.pad(w, ((0, Kp - K), (0, Np - N)))

    out = pl.pallas_call(
        _matmul_kernel,
        out_shape=jax.ShapeDtypeStruct((Mp, Np), out_dtype),
        grid_spec=pltpu.PrefetchScalarGridSpec(
            num_scalar_prefetch=0,
            grid=(Mp // tm, Np // tn, Kp // tk),
            in_specs=[pl.BlockSpec((tm, tk), lambda i, j, k: (i, k)),
                      pl.BlockSpec((tk, tn), lambda i, j, k: (k, j))],
            out_specs=pl.BlockSpec((tm, tn), lambda i, j, k: (i, j)),
            scratch_shapes=[pltpu.VMEM((tm, tn), jnp.float32)],
        ),
        compiler_params=pltpu.CompilerParams(
            dimension_semantics=("parallel", "parallel", "arbitrary"),
            vmem_limit_bytes=32 * 1024 * 1024),
    )(x, w)
    if (Mp, Np) != (M, N):
        out = out[:M, :N]
    return out


# --------------------------- chunked GLA recurrence kernel --------------------------
def _gla_chunk_kernel(q_ref, k_ref, v_ref, g_ref, lr_ref, w2_ref, bgk_ref, nw_ref,
                      o_ref, s_ref, *, scale, eps, normalizer, G, Dk, Dv, CT, U):
    @pl.when(pl.program_id(2) == 0)
    def _():
        s_ref[...] = jnp.zeros_like(s_ref)

    w2 = w2_ref[...]                                    # (128, BK) bf16, zero rows >= R
    bgk = bgk_ref[...].astype(jnp.float32)              # (1, BK)
    nw = nw_ref[...].astype(jnp.float32)                # (1, Dv) RMSNorm weight

    # causal structure for one CT sub-chunk (generated in-kernel, no HBM stream)
    row = jax.lax.broadcasted_iota(jnp.int32, (CT, CT), 0)
    col = jax.lax.broadcasted_iota(jnp.int32, (CT, CT), 1)
    causal = row >= col
    ltri = causal.astype(jnp.float32)                   # inclusive-cumsum operator

    def sub_chunk(u, carry):
        off = pl.multiple_of(u * CT, CT)
        q_all = q_ref[0, pl.ds(off, CT), :].astype(jnp.float32)       # (CT, BK)
        k_all = k_ref[0, pl.ds(off, CT), :].astype(jnp.float32)
        v_all = v_ref[0, pl.ds(off, CT), :]                           # bf16 (MXU only)
        g_all = g_ref[0, pl.ds(off, CT), :].astype(jnp.float32)
        lr = lr_ref[0, pl.ds(off, CT), :]                             # (CT, 128) bf16

        # fused low-rank gate projection: gk = logsigmoid(lr @ W2 + b) / normalizer
        gl = jnp.dot(lr, w2, preferred_element_type=jnp.float32) + bgk
        gk = (jnp.minimum(gl, 0.0)
              - jnp.log(1.0 + jnp.exp(-jnp.abs(gl)))) / normalizer    # (CT, BK) <= 0

        # inclusive causal cumsum over time, once for the whole head-group slab
        Gc = jnp.dot(ltri, gk, preferred_element_type=jnp.float32)    # (CT, BK)
        Gmid = Gc[CT // 2 - 1:CT // 2, :]       # mid-chunk reference (halves exponents)
        Glast = Gc[CT - 1:CT, :]
        e_mid = jnp.exp(Gmid)                                         # <= 1
        e_last = jnp.exp(Glast)                                       # <= 1
        q_s = (q_all * (jnp.exp(Gc - Gmid) * scale)).astype(jnp.bfloat16)
        k_d = (k_all * jnp.exp(Gmid - Gc)).astype(jnp.bfloat16)
        k_s = (k_all * jnp.exp(Glast - Gc)).astype(jnp.bfloat16)      # bounded decay

        for h in range(G):                      # static unroll over packed heads
            sk = slice(h * Dk, (h + 1) * Dk)
            sv = slice(h * Dv, (h + 1) * Dv)
            St = s_ref[h]                                             # (Dv, Dk) f32

            # fused q-side matmul: [carried state | intra-chunk keys] share LHS/contraction
            rhs = jnp.concatenate(
                [(St * e_mid[:, sk]).astype(jnp.bfloat16), k_d[:, sk]], axis=0)
            qk = jax.lax.dot_general(q_s[:, sk], rhs, (((1,), (1,)), ((), ())),
                                     preferred_element_type=jnp.float32)  # (CT, Dv+CT)
            A = jnp.where(causal, qk[:, Dv:], 0.0).astype(jnp.bfloat16)
            o = qk[:, :Dv] + jnp.dot(A, v_all[:, sv],
                                     preferred_element_type=jnp.float32)  # (CT, Dv)

            # state update:  S^T <- S^T * exp(G_last) + v^T (k * exp(G_last - Gc))
            vk = jax.lax.dot_general(v_all[:, sv], k_s[:, sk],
                                     (((0,), (0,)), ((), ())),
                                     preferred_element_type=jnp.float32)  # (Dv, Dk)
            s_ref[h] = St * e_last[:, sk] + vk

            # fused per-head RMSNorm + swish output gate; lane-offset store into block
            g_h = g_all[:, sv]
            var = jnp.mean(o * o, axis=-1, keepdims=True)
            o_n = o * jax.lax.rsqrt(var + eps) * nw
            o_ref[0, pl.ds(off, CT), pl.ds(h * Dv, Dv)] = (
                o_n * (g_h * jax.nn.sigmoid(g_h))).astype(o_ref.dtype)
        return carry

    jax.lax.fori_loop(0, U, sub_chunk, 0)


def _choose_gla_tiling(H, Dk, Dv, CT, budget=20 * 1024 * 1024):
    """Largest lane-aligned head group and chunks-per-step that fit the VMEM budget."""
    def est(g, u):
        bk = g * Dk
        ctu = CT * u
        io = 2 * 2 * ctu * (4 * bk + 128 + g * Dv)       # double-buffered bf16 blocks
        w2 = 2 * 2 * 128 * bk
        state = g * Dk * Dv * 4
        work = 4 * CT * bk * 10 + 4 * CT * (CT + Dv) * 2  # rough f32 temporaries
        return io + w2 + state + work

    aligned = [g for g in range(1, H + 1) if H % g == 0 and (g * Dk) % 128 == 0]
    if not aligned:
        aligned = [H]
    G = aligned[0]
    for g in aligned:                                     # largest that fits
        if est(g, 1) <= budget:
            G = g
    U = 1
    for u in (4, 2):
        if CT * u <= 256 and est(G, u) <= budget:
            U = u
            break
    return G, U


def pallas_gla(proj, wgk2p, bgk, norm_w, *, num_heads, C, CT, U, G,
               eps=1e-5, normalizer=16.0):
    B, Lp, _ = proj.shape
    H = num_heads
    Dk = Dv = C // H
    BK, BV = G * Dk, G * Dv
    HG = H // G
    CTU = CT * U
    NTU = Lp // CTU
    seg = C // BK                       # channel blocks per projection segment (= HG)
    lr_blk = (4 * C) // 128             # channel block index of the low-rank slot

    kernel = functools.partial(_gla_chunk_kernel, scale=Dk ** -0.5, eps=eps,
                               normalizer=normalizer, G=G, Dk=Dk, Dv=Dv, CT=CT, U=U)
    return pl.pallas_call(
        kernel,
        out_shape=jax.ShapeDtypeStruct((B, Lp, C), jnp.bfloat16),
        grid_spec=pltpu.PrefetchScalarGridSpec(
            num_scalar_prefetch=0,
            grid=(B, HG, NTU),
            in_specs=[
                pl.BlockSpec((1, CTU, BK), lambda b, hg, t: (b, t, hg)),            # q
                pl.BlockSpec((1, CTU, BK), lambda b, hg, t: (b, t, hg + seg)),      # k
                pl.BlockSpec((1, CTU, BK), lambda b, hg, t: (b, t, hg + 2 * seg)),  # v
                pl.BlockSpec((1, CTU, BK), lambda b, hg, t: (b, t, hg + 3 * seg)),  # g
                pl.BlockSpec((1, CTU, 128), lambda b, hg, t: (b, t, lr_blk)),       # low-rank
                pl.BlockSpec((128, BK), lambda b, hg, t: (0, hg)),                  # Wgk2
                pl.BlockSpec((1, BK), lambda b, hg, t: (0, hg)),                    # bgk
                pl.BlockSpec((1, Dv), lambda b, hg, t: (0, 0)),                     # norm w
            ],
            out_specs=pl.BlockSpec((1, CTU, BV), lambda b, hg, t: (b, t, hg)),
            scratch_shapes=[pltpu.VMEM((G, Dv, Dk), jnp.float32)],
        ),
        compiler_params=pltpu.CompilerParams(
            dimension_semantics=("parallel", "parallel", "arbitrary"),
            vmem_limit_bytes=32 * 1024 * 1024),
    )(proj, proj, proj, proj, proj, wgk2p, bgk, norm_w)


# ------------------------------------ wrapper ---------------------------------------
def gate_linear_attention(x, params, num_heads, *, chunk=64):
    """Forward of GateLinearAttention: returns output only (the module drops the rest)."""
    B, L, C = x.shape
    H = num_heads
    assert C % H == 0
    Dk = Dv = C // H
    R = params["wgk1"].shape[1]
    assert C % 128 == 0, "channel dim must be lane-aligned (multiple of 128)"
    assert R <= 128

    CT = min(chunk, _round_up(L, 8))
    G, U = _choose_gla_tiling(H, Dk, Dv, CT)
    U = min(U, max(1, -(-L // CT)))          # don't pad more chunks than needed
    CTU = CT * U
    Lp = _round_up(L, CTU)

    xp = x if Lp == L else jnp.pad(x, ((0, 0), (0, Lp - L), (0, 0)))
    x2 = xp.reshape(B * Lp, C).astype(jnp.bfloat16)

    # ONE fused projection matmul: x read once for q/k/v/g and the gk low-rank factor.
    # The low-rank slot is padded to a full 128-lane block so the GLA kernel addresses
    # proj directly (no slicing / reshape / pad copies of proj afterwards).
    w_lr = jnp.pad(params["wgk1"], ((0, 0), (0, 128 - R)))
    w_fused = jnp.concatenate([params["wq"], params["wk"], params["wv"],
                               params["wg"], w_lr], axis=1)             # (C, 4C+128)
    proj = pallas_matmul(x2, w_fused, out_dtype=jnp.bfloat16)           # (B*Lp, 4C+128)
    proj = proj.reshape(B, Lp, 4 * C + 128)

    wgk2p = jnp.pad(params["wgk2"], ((0, 128 - R), (0, 0))).astype(jnp.bfloat16)
    bgk = params["bgk"].reshape(1, C).astype(jnp.float32)
    norm_w = params["g_norm_w"].reshape(1, Dv).astype(jnp.float32)

    o = pallas_gla(proj, wgk2p, bgk, norm_w, num_heads=H, C=C,
                   CT=CT, U=U, G=G)                                     # (B, Lp, C) bf16

    out = pallas_matmul(o.reshape(B * Lp, C), params["wo"], out_dtype=jnp.float32)
    out = out.reshape(B, Lp, C)
    return out[:, :L, :] if Lp != L else out


def init_params(key, dim, num_heads, gate_low_rank_dim=16):
    ks = jax.random.split(key, 7)

    def lin(k, fan_in, fan_out):
        return jax.random.normal(k, (fan_in, fan_out), jnp.float32) / jnp.sqrt(fan_in)

    return {
        "wq": lin(ks[0], dim, dim),
        "wk": lin(ks[1], dim, dim),
        "wv": lin(ks[2], dim, dim),
        "wg": lin(ks[3], dim, dim),
        "wgk1": lin(ks[4], dim, gate_low_rank_dim),
        "wgk2": lin(ks[5], gate_low_rank_dim, dim),
        "bgk": jnp.zeros((dim,), jnp.float32),
        "wo": lin(ks[6], dim, dim),
        "g_norm_w": jnp.ones((1, dim // num_heads), jnp.float32),  # per-head RMSNorm weight
    }


if __name__ == "__main__":
    B, L, DIM, HEADS = 2, 8, 128, 4   # head dim = 32, lane-aligned channel dim

    root = jax.random.PRNGKey(0)
    k_param, k_x = jax.random.split(root)
    params = init_params(k_param, DIM, HEADS)
    x = jax.random.normal(k_x, (B, L, DIM), jnp.float32)

    out = gate_linear_attention(x, params, HEADS)
    out = jax.block_until_ready(out)
    assert out.shape == (B, L, DIM)
    assert bool(jnp.all(jnp.isfinite(out)))
    print("KERNEL_OK")
</pallas_src>

<mosaic_0001>
module attributes {stable_mosaic.version = 11 : i64} {
  func.func @_matmul_kernel(%arg0: i32, %arg1: i32, %arg2: i32, %arg3: memref<16x128xbf16, #tpu.memory_space<vmem>>, %arg4: memref<128x640xbf16, #tpu.memory_space<vmem>>, %arg5: memref<16x640xbf16, #tpu.memory_space<vmem>>, %arg6: memref<16x640xf32, #tpu.memory_space<vmem>>) attributes {dimension_semantics = [#tpu.dimension_semantics<parallel>, #tpu.dimension_semantics<parallel>, #tpu.dimension_semantics<arbitrary>], iteration_bounds = array<i64: 1, 1, 1>, scalar_prefetch = 0 : i64, scratch_operands = 1 : i64, tpu.core_type = #tpu.core_type<tc>, window_params = [{transform_indices = @transform_0, window_bounds = array<i64: 16, 128>}, {transform_indices = @transform_1, window_bounds = array<i64: 128, 640>}, {transform_indices = @transform_2, window_bounds = array<i64: 16, 640>}]} {
    %c0_i32 = arith.constant 0 : i32
    %0 = arith.cmpi eq, %arg2, %c0_i32 : i32
    %1 = arith.extui %0 : i1 to i32
    %c0_i32_0 = arith.constant 0 : i32
    %2 = arith.cmpi ne, %1, %c0_i32_0 : i32
    scf.if %2 {
      %cst_10 = arith.constant 0.000000e+00 : f32
      %12 = vector.broadcast %cst_10 : f32 to vector<16x640xf32>
      %c0_11 = arith.constant 0 : index
      %c0_12 = arith.constant 0 : index
      %13 = vector.load %arg6[%c0_11, %c0_12] : memref<16x640xf32, #tpu.memory_space<vmem>>, vector<16x640xf32>
      tpu.vector_store %arg6[%c0_11, %c0_12], %12 {strides = array<i32>} : memref<16x640xf32, #tpu.memory_space<vmem>>, vector<16x640xf32>,
    } else {
    }
    %c0 = arith.constant 0 : index
    %c0_1 = arith.constant 0 : index
    %3 = vector.load %arg6[%c0, %c0_1] : memref<16x640xf32, #tpu.memory_space<vmem>>, vector<16x640xf32>
    %c0_2 = arith.constant 0 : index
    %c0_3 = arith.constant 0 : index
    %4 = vector.load %arg3[%c0_2, %c0_3] : memref<16x128xbf16, #tpu.memory_space<vmem>>, vector<16x128xbf16>
    %c0_4 = arith.constant 0 : index
    %c0_5 = arith.constant 0 : index
    %5 = vector.load %arg4[%c0_4, %c0_5] : memref<128x640xbf16, #tpu.memory_space<vmem>>, vector<128x640xbf16>
    %cst = arith.constant dense<0.000000e+00> : vector<16x640xf32>
    %6 = tpu.matmul %4, %5, %cst {dimension_numbers = #tpu.dot_dimension_numbers<[1], [0], [0], [1], [0, 0, 1, 1], [], []>} : vector<16x128xbf16>, vector<128x640xbf16>, vector<16x640xf32> -> vector<16x640xf32>
    %7 = arith.addf %3, %6 : vector<16x640xf32>
    %c0_6 = arith.constant 0 : index
    %c0_7 = arith.constant 0 : index
    %8 = vector.load %arg6[%c0_6, %c0_7] : memref<16x640xf32, #tpu.memory_space<vmem>>, vector<16x640xf32>
    tpu.vector_store %arg6[%c0_6, %c0_7], %7 {strides = array<i32>} : memref<16x640xf32, #tpu.memory_space<vmem>>, vector<16x640xf32>,
    %c0_i32_8 = arith.constant 0 : i32
    %9 = arith.cmpi eq, %arg2, %c0_i32_8 : i32
    %10 = arith.extui %9 : i1 to i32
    %c0_i32_9 = arith.constant 0 : i32
    %11 = arith.cmpi ne, %10, %c0_i32_9 : i32
    scf.if %11 {
      %c0_10 = arith.constant 0 : index
      %c0_11 = arith.constant 0 : index
      %12 = vector.load %arg6[%c0_10, %c0_11] : memref<16x640xf32, #tpu.memory_space<vmem>>, vector<16x640xf32>
      %13 = arith.truncf %12 : vector<16x640xf32> to vector<16x640xbf16>
      %c0_12 = arith.constant 0 : index
      %c0_13 = arith.constant 0 : index
      %14 = vector.load %arg5[%c0_12, %c0_13] : memref<16x640xbf16, #tpu.memory_space<vmem>>, vector<16x640xbf16>
      tpu.vector_store %arg5[%c0_12, %c0_13], %13 {strides = array<i32>} : memref<16x640xbf16, #tpu.memory_space<vmem>>, vector<16x640xbf16>,
    } else {
    }
    return
  }
  func.func @transform_0(%arg0: i32, %arg1: i32, %arg2: i32) -> (i32, i32) {
    %c0_i32 = arith.constant 0 : i32
    return %arg0, %arg2 : i32, i32
  }
  func.func @transform_1(%arg0: i32, %arg1: i32, %arg2: i32) -> (i32, i32) {
    %c0_i32 = arith.constant 0 : i32
    return %arg2, %arg1 : i32, i32
  }
  func.func @transform_2(%arg0: i32, %arg1: i32, %arg2: i32) -> (i32, i32) {
    %c0_i32 = arith.constant 0 : i32
    return %arg0, %arg1 : i32, i32
  }
}

</mosaic_0001>

<bundles_post_ra>
// kernel: tpu_custom_call.1
= control target key start
LH: loop header
LB: loop body
LE: loop exit
PB: predicated region body
PF: predicated region fallthrough
CT: control target
= control target key end

     0   :  { %7 = vsyncpa [#allocation4], 0  ;;  %s800_s0 = inlined_call_operand.hbm [shape: bf16[16,128], index: 0, kind: input, shape index: {}]   ;;  %s801_s1 = inlined_call_operand.hbm [shape: bf16[128,640], index: 1, kind: input, shape index: {}]   ;;  %s802_s2 = inlined_call_operand.hbm [shape: bf16[16,640], index: 2, kind: output, shape index: {}]  }
   0x1   :  { %8 = vsyncpa [#allocation7], 0 }
   0x2   :  { %9 = vsyncpa [#allocation5], 0  ;;  %s760_s9 = smov [#allocation3]  }
   0x3   :  { %s15_s10 = sshll.u32 %s760_s9, 4  ;;  %s16_s10 = int_to_ptr.vmem [resolvable:$true] %s15_s10 }
   0x4   :  { %s702_s11 = scalar_lea.vmem %s16_s10, 128  ;;  %p707_p1 = scmp.lt.s32.totalorder %s16_s10, %s16_s10 }
   0x5   :  { %p703_p0 = scmp.ne.s32.totalorder %s16_s10, %s702_s11  ;;  %p708_p2 = scmp.lt.s32.totalorder %s702_s11, %s702_s11 }
   0x7   :  { %p709_p3 = por %p708_p2, %p707_p1 }
   0x9   :  { %p710_p4 = pnand %p709_p3, %p703_p0 }
   0xb   :  { %713 = shalt.err (!%p710_p4)
}
   0xc   :  { %s761_s12 = smov 64   ;;  %s762_s13 = smov 4  }
   0xd   :  { %21 = dma.hbm_to_vmem [thread:$0]  %s800_s0, 128, %s16_s10, [#allocation4], %s761_s12, %s761_s12, %s762_s13  }
   0xe   :  { %s763_s16 = smov [#allocation6]  }
   0xf   :  { %s27_s17 = sshll.u32 %s763_s16, 4  ;;  %s28_s17 = int_to_ptr.vmem [resolvable:$true] %s27_s17 }
  0x10   :  { %s722_s18 = scalar_lea.vmem %s28_s17, 5120  ;;  %p727_p6 = scmp.lt.s32.totalorder %s28_s17, %s28_s17 }
  0x11   :  { %p723_p5 = scmp.ne.s32.totalorder %s28_s17, %s722_s18  ;;  %p728_p7 = scmp.lt.s32.totalorder %s722_s18, %s722_s18 }
  0x13   :  { %p729_p8 = por %p728_p7, %p727_p6 }
  0x15   :  { %p730_p9 = pnand %p729_p8, %p723_p5 }
  0x17   :  { %733 = shalt.err (!%p730_p9)
}
  0x18   :  { %s764_s19 = smov 320   ;;  %s765_s20 = smov 20  }
  0x19   :  { %33 = dma.hbm_to_vmem [thread:$0]  %s801_s1, 5120, %s28_s17, [#allocation7], %s764_s19, %s764_s19, %s765_s20  }
  0x1a   :  { %754 = dma.done.wait [#allocation4], 128  }
  0x1b   :  { %755 = vsyncadd [#allocation4], 4294967168 }
  0x1c   :  { %756 = dma.done.wait [#allocation7], 5120  }
  0x1d   :  { %757 = vsyncadd [#allocation7], 4294962176  ;;  %v766_v0 = vmov 0   ;;  %v637_v1 = vld [vmem:[#allocation6 + $0x11c] ss:$20 sps:$4 sm:$0xff]   ;;  %v767_v32 = vmov 0.0  }
  0x1e   :  { %361 = vmatprep.mubr.bf16.mxu0 %v766_v0  ;;  %404 = vmatprep.mubr.bf16.mxu1 %v766_v0  ;;  %v639_v2 = vld [vmem:[#allocation6 + $0x118] ss:$20 sps:$4 sm:$0xff]   ;;  %v640_v3 = vld [vmem:[#allocation6 + $0xf4] ss:$20 sps:$4 sm:$0xff]   ;;  %v642_v4 = vld [vmem:[#allocation6 + $0xf0] ss:$20 sps:$4 sm:$0xff]  }
  0x1f   :  { %329 = vmatprep.subr.bf16.mxu0 %v637_v1  ;;  %v643_v5 = vld [vmem:[#allocation6 + $0xcc] ss:$20 sps:$4 sm:$0xff]   ;;  %v645_v6 = vld [vmem:[#allocation6 + $0xc8] ss:$20 sps:$4 sm:$0xff]   ;;  %v646_v7 = vld [vmem:[#allocation6 + $0xa4] ss:$20 sps:$4 sm:$0xff]  }
  0x20   :  { %330 = vmatpush1.bf16.msra.mxu0 %v639_v2  ;;  %v657_v8 = vld [vmem:[#allocation6 + $0x124] ss:$20 sps:$4 sm:$0xff]   ;;  %v660_v9 = vld [vmem:[#allocation6 + $0x120] ss:$20 sps:$4 sm:$0xff]   ;;  %v649_v11 = vld [vmem:[#allocation6 + $0x7c] ss:$20 sps:$4 sm:$0xff]  }
  0x21   :  { %331 = vmatprep.subr.bf16.mxu0 %v640_v3  ;;  %v648_v10 = vld [vmem:[#allocation6 + $0xa0] ss:$20 sps:$4 sm:$0xff]   ;;  %372 = vmatprep.subr.bf16.mxu1 %v657_v8  ;;  %v663_v12 = vld [vmem:[#allocation6 + $0xfc] ss:$20 sps:$4 sm:$0xff]   ;;  %v666_v13 = vld [vmem:[#allocation6 + $0xf8] ss:$20 sps:$4 sm:$0xff]  }
  0x22   :  { %373 = vmatpush1.bf16.msra.mxu1 %v660_v9  ;;  %v651_v14 = vld [vmem:[#allocation6 + $0x78] ss:$20 sps:$4 sm:$0xff]   ;;  %v652_v15 = vld [vmem:[#allocation6 + $0x54] ss:$20 sps:$4 sm:$0xff]   ;;  %v670_v17 = vld [vmem:[#allocation6 + $0xd0] ss:$20 sps:$4 sm:$0xff]  }
  0x23   :  { %374 = vmatprep.subr.bf16.mxu1 %v663_v12  ;;  %v668_v16 = vld [vmem:[#allocation6 + $0xd4] ss:$20 sps:$4 sm:$0xff]   ;;  %v672_v18 = vld [vmem:[#allocation6 + $0xac] ss:$20 sps:$4 sm:$0xff]   ;;  %v654_v19 = vld [vmem:[#allocation6 + $0x50] ss:$20 sps:$4 sm:$0xff]  }
  0x24   :  { %332 = vmatpush1.bf16.msra.mxu0 %v642_v4  ;;  %v655_v20 = vld [vmem:[#allocation6 + $0x2c] ss:$20 sps:$4 sm:$0xff]   ;;  %v674_v21 = vld [vmem:[#allocation6 + $0xa8] ss:$20 sps:$4 sm:$0xff]   ;;  %v676_v22 = vld [vmem:[#allocation6 + $0x84] ss:$20 sps:$4 sm:$0xff]  }
  0x25   :  { %333 = vmatprep.subr.bf16.mxu0 %v643_v5  ;;  %v659_v23 = vld [vmem:[#allocation6 + $0x28] ss:$20 sps:$4 sm:$0xff]   ;;  %v661_v24 = vld [vmem:[#allocation6 + $0x4] ss:$20 sps:$4 sm:$0xff]   ;;  %v678_v25 = vld [vmem:[#allocation6 + $0x80] ss:$20 sps:$4 sm:$0xff]  }
  0x26   :  { %375 = vmatpush1.bf16.msra.mxu1 %v666_v13  ;;  %v680_v26 = vld [vmem:[#allocation6 + $0x5c] ss:$20 sps:$4 sm:$0xff]   ;;  %v665_v27 = vld [vmem:[#allocation6] ss:$20 sps:$4 sm:$0xff]   ;;  %v682_v28 = vld [vmem:[#allocation6 + $0x58] ss:$20 sps:$4 sm:$0xff]  }
  0x27   :  { %376 = vmatprep.subr.bf16.mxu1 %v668_v16  ;;  %v684_v29 = vld [vmem:[#allocation6 + $0x34] ss:$20 sps:$4 sm:$0xff]   ;;  %v667_v30 = vld [vmem:[#allocation3] sm:$0xff]   ;;  %v686_v33 = vld [vmem:[#allocation6 + $0x30] ss:$20 sps:$4 sm:$0xff]   ;;  %vm768_vm0 = vmmov 0  }
  0x28   :  { %334 = vmatpush1.bf16.msra.mxu0 %v645_v6  ;;  %v671_v31 = vld [vmem:[#allocation6 + $0x128] ss:$20 sps:$4 sm:$0xff]   ;;  %v688_v34 = vld [vmem:[#allocation6 + $0xc] ss:$20 sps:$4 sm:$0xff]   ;;  %v683_v38 = vld [vmem:[#allocation6 + $0xb0] ss:$20 sps:$4 sm:$0xff]  }
  0x29   :  { %335 = vmatprep.subr.bf16.mxu0 %v646_v7  ;;  %v675_v35 = vld [vmem:[#allocation6 + $0x100] ss:$20 sps:$4 sm:$0xff]   ;;  %v690_v36 = vld [vmem:[#allocation6 + $0x8] ss:$20 sps:$4 sm:$0xff]   ;;  %v679_v37 = vld [vmem:[#allocation6 + $0xd8] ss:$20 sps:$4 sm:$0xff]  }
  0x2a   :  { %377 = vmatpush1.bf16.msra.mxu1 %v670_v17  ;;  %v687_v39 = vld [vmem:[#allocation6 + $0x88] ss:$20 sps:$4 sm:$0xff]   ;;  %v691_v40 = vld [vmem:[#allocation6 + $0x60] ss:$20 sps:$4 sm:$0xff]   ;;  %v692_v41 = vld [vmem:[#allocation6 + $0x38] ss:$20 sps:$4 sm:$0xff]  }
  0x2b   :  { %378 = vmatprep.subr.bf16.mxu1 %v672_v18  ;;  %v693_v42 = vld [vmem:[#allocation6 + $0x10] ss:$20 sps:$4 sm:$0xff]   ;;  %s769_s0 = smov [#allocation8]  }
  0x2c   :  { %336 = vmatpush1.bf16.msra.mxu0 %v648_v10  ;;  %s532_s1 = sshll.u32 %s769_s0, 4  ;;  %s533_s1 = int_to_ptr.vmem [resolvable:$true] %s532_s1 }
  0x2d   :  { %337 = vmatprep.subr.bf16.mxu0 %v649_v11  ;;  %s734_s23 = scalar_lea.vmem %s533_s1, 640  ;;  %p739_p11 = scmp.lt.s32.totalorder %s533_s1, %s533_s1 }
  0x2e   :  { %379 = vmatpush1.bf16.msra.mxu1 %v674_v21  ;;  %p735_p10 = scmp.ne.s32.totalorder %s533_s1, %s734_s23  ;;  %p740_p12 = scmp.lt.s32.totalorder %s734_s23, %s734_s23 }
  0x2f   :  { %380 = vmatprep.subr.bf16.mxu1 %v676_v22 }
  0x30   :  { %338 = vmatpush1.bf16.msra.mxu0 %v651_v14  ;;  %p741_p13 = por %p740_p12, %p739_p11 }
  0x31   :  { %339 = vmatprep.subr.bf16.mxu0 %v652_v15 }
  0x32   :  { %381 = vmatpush1.bf16.msra.mxu1 %v678_v25  ;;  %p742_p0 = pnand %p741_p13, %p735_p10 }
  0x33   :  { %382 = vmatprep.subr.bf16.mxu1 %v680_v26 }
  0x34   :  { %340 = vmatpush1.bf16.msra.mxu0 %v654_v19 }
  0x35   :  { %341 = vmatprep.subr.bf16.mxu0 %v655_v20 }
  0x36   :  { %383 = vmatpush1.bf16.msra.mxu1 %v682_v28 }
  0x37   :  { %384 = vmatprep.subr.bf16.mxu1 %v684_v29 }
  0x38   :  { %342 = vmatpush1.bf16.msra.mxu0 %v659_v23 }
  0x39   :  { %343 = vmatprep.subr.bf16.mxu0 %v661_v24 }
  0x3a   :  { %385 = vmatpush1.bf16.msra.mxu1 %v686_v33 }
  0x3b   :  { %386 = vmatprep.subr.bf16.mxu1 %v688_v34 }
  0x3c   :  { %344 = vmatpush1.bf16.msra.mxu0 %v665_v27 }
  0x3d   :  { %607 = vmatprep.subr.bf16.mxu0 %v767_v32 }
  0x3e   :  { %387 = vmatpush1.bf16.msra.mxu1 %v690_v36 }
  0x3f   :  { %362 = vmatmul.mubr.bf16.vlgmr.msra.gmra.mxu0 %v667_v30 }
  0x40   :  { %608 = vmatpush3.bf16.msra.mxu0 %v671_v31  ;;  %623 = vmatprep.mubr.msk.bf16.mxu0 %vm768_vm0, %v767_v32 }
  0x41   :  { %609 = vmatprep.subr.bf16.mxu0 %v767_v32  ;;  %405 = vmatmul.mubr.bf16.vlgmr.msra.gmra.mxu1 %v667_v30 }
  0x44   :  { %610 = vmatpush3.bf16.msra.mxu0 %v675_v35 }
  0x45   :  { %611 = vmatprep.subr.bf16.mxu0 %v767_v32 }
  0x48   :  { %612 = vmatpush3.bf16.msra.mxu0 %v679_v37 }
  0x49   :  { %613 = vmatprep.subr.bf16.mxu0 %v767_v32 }
  0x4c   :  { %614 = vmatpush3.bf16.msra.mxu0 %v683_v38 }
  0x4d   :  { %615 = vmatprep.subr.bf16.mxu0 %v767_v32 }
  0x50   :  { %616 = vmatpush3.bf16.msra.mxu0 %v687_v39 }
  0x51   :  { %617 = vmatprep.subr.bf16.mxu0 %v767_v32 }
  0x54   :  { %618 = vmatpush3.bf16.msra.mxu0 %v691_v40 }
  0x55   :  { %619 = vmatprep.subr.bf16.mxu0 %v767_v32 }
  0x58   :  { %620 = vmatpush3.bf16.msra.mxu0 %v692_v41 }
  0x59   :  { %621 = vmatprep.subr.bf16.mxu0 %v767_v32 }
  0x5c   :  { %622 = vmatpush3.bf16.msra.mxu0 %v693_v42 }
  0x5f   :  { %624 = vmatmul.mubr.bf16.vlgmr.msra.gmra.mxu0 %v667_v30 }
  0xff   :  { %v363_v43 = vpop.f32.mrf.mxu0 }
 0x101   :  { %v365_v44 = vpop.f32.mrf.mxu0  ;;  %v406_v49 = vpop.f32.mrf.mxu1 }
 0x102   :  { %v592_v45 = vpack.c.bf16 %v365_v44, %v363_v43 }
 0x103   :  { %v367_v46 = vpop.f32.mrf.mxu0  ;;  %v408_v50 = vpop.f32.mrf.mxu1 }
 0x104   :  { %521 = vst [vmem:[#allocation8] sm:$0xff] %v592_v45  ;;  %v593_v51 = vpack.c.bf16 %v408_v50, %v406_v49 }
 0x105   :  { %v369_v47 = vpop.f32.mrf.mxu0  ;;  %v410_v52 = vpop.f32.mrf.mxu1 }
 0x106   :  { %v595_v48 = vpack.c.bf16 %v369_v47, %v367_v46  ;;  %522 = vst [vmem:[#allocation8 + $0x8] sm:$0xff] %v593_v51 }
 0x107   :  { %v412_v53 = vpop.f32.mrf.mxu1 }
 0x108   :  { %524 = vst [vmem:[#allocation8 + $0x14] sm:$0xff] %v595_v48  ;;  %v596_v54 = vpack.c.bf16 %v412_v53, %v410_v52 }
 0x10a   :  { %525 = vst [vmem:[#allocation8 + $0x1c] sm:$0xff] %v596_v54 }
 0x11f   :  { %v449_v55 = vpop.f32.mrf.mxu0 }
 0x120   :  { %v594_v56 = vpack.c.bf16 %v449_v55, %v449_v55 }
 0x121   :  { %v625_v57 = vpop.f32.mrf.mxu0 }
 0x122   :  { %523 = vst [vmem:[#allocation8 + $0x10] sm:$0xf] %v594_v56 }
 0x123   :  { %v452_v58 = vpop.f32.mrf.mxu0 }
 0x124   :  { %v597_v59 = vpack.c.bf16 %v452_v58, %v452_v58 }
 0x125   :  { %v626_v60 = vpop.f32.mrf.mxu0 }
 0x126   :  { %526 = vst [vmem:[#allocation8 + $0x24] sm:$0xf] %v597_v59 }
 0x127   :  { %745 = shalt.err (!%p742_p0)
}
 0x128   :  { %538 = dma.vmem_to_hbm [thread:$0]  %s533_s1, 640, %s802_s2, [#allocation5], %s764_s19, %s764_s19, %s765_s20  }
 0x129   :  { %758 = dma.done.wait [#allocation5], 640  }
 0x12a   :  { %759 = vsyncadd [#allocation5], 4294966656 }
 0x12b   :  { %542 = vsyncpa [#allocation4], 1 }
 0x12c   :  { %543 = vsyncpa [#allocation7], 1 }
 0x12d   :  { %544 = vsyncpa [#allocation5], 1 }

</bundles_post_ra>
